<compile_context>
chip_gen: v7x
topology: tpu7x:2x2x1
jax: 0.10.0
libtpu: 0.0.40
codegen_flags: <defaults>
</compile_context>

<pallas_src>
import numpy as np
import jax
import jax.numpy as jnp
from jax.experimental import pallas as pl
from jax.experimental.pallas import tpu as pltpu


# ----------------------------------------------------------------------------
# Model configuration (PyTorch AreaSpecificCNN2 args, small synthetic shapes)
# ----------------------------------------------------------------------------
TASK_NUM = 2
FREQ_NUM = 4          # Conv1d in_channels of the first common layer
FRAME_NUM = 32        # input time length
BATCH = 2
COMMON_LAYERS = [     # (kernel_size, dilation, out_ch, pool)
    (3, 1, 8, 2),
]
TASK_LAYERS = [
    [(3, 1, 8, 2)],   # task 0
    [(5, 1, 6, 2)],   # task 1
]
OUT_FEATURES = 1
SLAB_WIDTH = 128      # lane width of the packed parameter slab


def conv_out_len(L, k, d, p):
    return (L - d * (k - 1)) // p


def layer_dims(L, C, layers):
    """Static per-layer dims: (K, dilation, pool, C_in, C_out, L_conv, L_pool)."""
    dims = []
    for (k, d, c_out, p) in layers:
        L_conv = L - d * (k - 1)
        L_pool = L_conv // p
        dims.append((k, d, p, C, c_out, L_conv, L_pool))
        L, C = L_pool, c_out
    return dims, L, C


# ----------------------------------------------------------------------------
# Parameter slab layout: every weight/bias lives at a static row offset of one
# (rows, 128) f32 array.  Entries are 8-sublane aligned.
# ----------------------------------------------------------------------------
class SlabLayout:
    def __init__(self, width=SLAB_WIDTH):
        self.width = width
        self.rows = 0
        self.entries = {}                       # name -> (row_offset, (r, c))

    def add(self, name, shape):
        r, c = shape
        assert c <= self.width, f"{name}: {c} > slab width {self.width}"
        self.entries[name] = (self.rows, (r, c))
        self.rows += ((r + 7) // 8) * 8

    def offset(self, name):
        return self.entries[name][0]


def build_layout(B, L_in, C_in, common_layers, task_layers, task_num,
                 out_features):
    common_dims, Lc, Cc = layer_dims(L_in, C_in, common_layers)
    task_dims, reg_dims = [], []
    for t in range(task_num):
        dims, Lt, Ct = layer_dims(Lc, Cc, task_layers[t])
        task_dims.append(dims)
        reg_dims.append((Lt, Ct))

    lay = SlabLayout()
    for li, (K, _d, _p, c_in, c_out, _Lc, _Lp) in enumerate(common_dims):
        for k in range(K):
            lay.add(f"cw{li}_{k}", (B * c_in, B * c_out))    # block-diag tap W
        lay.add(f"cb{li}", (1, B * c_out))                   # batch-tiled bias
    for t in range(task_num):
        for li, (K, _d, _p, c_in, c_out, _Lc, _Lp) in enumerate(task_dims[t]):
            for k in range(K):
                lay.add(f"tw{t}_{li}_{k}", (B * c_in, B * c_out))
            lay.add(f"tb{t}_{li}", (1, B * c_out))
    for t in range(task_num):
        Lt, Ct = reg_dims[t]
        for b in range(B):
            lay.add(f"rw{t}_{b}", (Lt, B * Ct))              # per-batch masked tile
        lay.add(f"rb{t}", (1, 1))
    lay.add("fw", (task_num, out_features))                  # final linear W^T
    lay.add("fb", (1, out_features))
    return lay, common_dims, task_dims, reg_dims


LAYOUT, COMMON_DIMS, TASK_DIMS, REG_DIMS = build_layout(
    BATCH, FRAME_NUM, FREQ_NUM, COMMON_LAYERS, TASK_LAYERS, TASK_NUM,
    OUT_FEATURES)


# ----------------------------------------------------------------------------
# Fused forward kernel
# ----------------------------------------------------------------------------
def make_fused_forward(B, L_in, C_in, lay, common_dims, task_dims, task_num,
                       out_features):
    n_common = len(common_dims)
    n_task = [len(td) for td in task_dims]
    out_w = out_features + task_num

    def kernel(x_ref, p_ref, out_ref, *scratch):
        it = iter(scratch)
        common_scr = [next(it) for _ in range(n_common)]
        task_scr = [[next(it) for _ in range(n_task[t])] for t in range(task_num)]

        def pslice(name):
            off, (r, c) = lay.entries[name]
            return p_ref[pl.ds(off, r), pl.ds(0, c)]

        def conv_relu_pool(x_val, dims, w_names, b_name, scr):
            """Batch-folded conv (block-diag W) + ReLU + truncating max-pool."""
            K, dil, pool, _c_in, c_out, L_conv, L_pool = dims
            cols = B * c_out
            # Independent per-tap dots, tree-summed (no serial acc += dot chain)
            taps = [jnp.dot(x_val[k * dil:k * dil + L_conv, :],
                            pslice(w_names[k]),
                            preferred_element_type=jnp.float32)
                    for k in range(K)]
            while len(taps) > 1:
                nxt = [taps[i] + taps[i + 1] for i in range(0, len(taps) - 1, 2)]
                if len(taps) % 2:
                    nxt.append(taps[-1])
                taps = nxt
            bias = jnp.broadcast_to(pslice(b_name), (L_conv, cols))
            scr[...] = jnp.maximum(taps[0] + bias, 0.0)       # ReLU, full res
            pooled = scr[pl.ds(0, L_pool, stride=pool), :]
            for p in range(1, pool):                          # MaxPool1d
                pooled = jnp.maximum(
                    pooled, scr[pl.ds(p, L_pool, stride=pool), :])
            return pooled                                     # value (L_pool, B*c_out)

        # ---- common trunk (whole batch at once) ----
        cur = x_ref[...]                                      # (L_in, B*C_in)
        for li in range(n_common):
            names = [f"cw{li}_{k}" for k in range(common_dims[li][0])]
            cur = conv_relu_pool(cur, common_dims[li], names, f"cb{li}",
                                 common_scr[li])
        common_act = cur

        # ---- task branches + per-task regressors ----
        r = [[None] * task_num for _ in range(B)]             # (1,1) scalars
        for t in range(task_num):
            cur = common_act
            for li in range(n_task[t]):
                names = [f"tw{t}_{li}_{k}" for k in range(task_dims[t][li][0])]
                cur = conv_relu_pool(cur, task_dims[t][li], names,
                                     f"tb{t}_{li}", task_scr[t][li])
            rb = pslice(f"rb{t}")
            for b in range(B):
                # per-batch lane-masked weight tile -> torch.flatten(B,C,T) order
                v = cur * pslice(f"rw{t}_{b}")
                s = jnp.sum(v, axis=1, keepdims=True)         # (L_t, 1)
                r[b][t] = jnp.sum(s, axis=0, keepdims=True) + rb   # (1, 1)

        # ---- final linear on the VPU + single merged (B, OF + T) output ----
        fw_off = lay.offset("fw")
        fb = pslice("fb")                                     # (1, out_features)
        for b in range(B):
            y_b = fb
            for t in range(task_num):
                w_row = p_ref[pl.ds(fw_off + t, 1), pl.ds(0, out_features)]
                y_b = y_b + r[b][t] * w_row
                out_ref[pl.ds(b, 1), pl.ds(out_features + t, 1)] = r[b][t]
            out_ref[pl.ds(b, 1), pl.ds(0, out_features)] = y_b

    x_shape = (L_in, B * C_in)
    p_shape = (lay.rows, SLAB_WIDTH)
    scratch_shapes = [pltpu.VMEM((d[5], B * d[4]), jnp.float32)
                      for d in common_dims]
    for t in range(task_num):
        scratch_shapes += [pltpu.VMEM((d[5], B * d[4]), jnp.float32)
                           for d in task_dims[t]]

    return pl.pallas_call(
        kernel,
        out_shape=jax.ShapeDtypeStruct((B, out_w), jnp.float32),
        grid=(1,),
        in_specs=[pl.BlockSpec(x_shape, lambda i: (0, 0)),
                  pl.BlockSpec(p_shape, lambda i: (0, 0))],
        out_specs=pl.BlockSpec((B, out_w), lambda i: (0, 0)),
        scratch_shapes=scratch_shapes,
    )


FUSED = make_fused_forward(BATCH, FRAME_NUM, FREQ_NUM, LAYOUT, COMMON_DIMS,
                           TASK_DIMS, TASK_NUM, OUT_FEATURES)


# ----------------------------------------------------------------------------
# Parameter init (PyTorch weight conventions) and one-time slab packing
# ----------------------------------------------------------------------------
def init_params(key):
    def conv_p(key, c_in, c_out, k):
        k1, k2 = jax.random.split(key)
        w = jax.random.normal(k1, (c_out, c_in, k), jnp.float32) * 0.1
        b = jax.random.normal(k2, (c_out,), jnp.float32) * 0.1
        return w, b

    def lin_p(key, f_in, f_out):
        k1, k2 = jax.random.split(key)
        w = jax.random.normal(k1, (f_out, f_in), jnp.float32) * 0.1
        b = jax.random.normal(k2, (f_out,), jnp.float32) * 0.1
        return w, b

    params = {"common": [], "task_conv": [], "task_reg": []}
    keys = jax.random.split(key, 64)
    ki = 0
    c_in, L = FREQ_NUM, FRAME_NUM
    for (k, d, c_out, p) in COMMON_LAYERS:
        params["common"].append((*conv_p(keys[ki], c_in, c_out, k), d, p)); ki += 1
        c_in, L = c_out, conv_out_len(L, k, d, p)
    common_c, common_L = c_in, L
    for t in range(TASK_NUM):
        layers = []
        c_in, L = common_c, common_L
        for (k, d, c_out, p) in TASK_LAYERS[t]:
            layers.append((*conv_p(keys[ki], c_in, c_out, k), d, p)); ki += 1
            c_in, L = c_out, conv_out_len(L, k, d, p)
        params["task_conv"].append(layers)
        params["task_reg"].append(lin_p(keys[ki], L * c_in, 1)); ki += 1
    params["reg"] = lin_p(keys[ki], TASK_NUM, OUT_FEATURES)
    return params


def pack_params(params, lay, reg_dims):
    """Precompute all weight-layout transforms once, into a single f32 slab."""
    slab = np.zeros((lay.rows, SLAB_WIDTH), np.float32)

    def put(name, arr):
        off, (r, c) = lay.entries[name]
        arr = np.asarray(arr, np.float32)
        assert arr.shape == (r, c), (name, arr.shape, (r, c))
        slab[off:off + r, :c] = arr

    eye = np.eye(BATCH, dtype=np.float32)
    for li, (w, b, _d, _p) in enumerate(params["common"]):
        for k in range(w.shape[2]):
            put(f"cw{li}_{k}", np.kron(eye, np.asarray(w[:, :, k]).T))
        put(f"cb{li}", np.tile(np.asarray(b), BATCH).reshape(1, -1))
    for t in range(TASK_NUM):
        for li, (w, b, _d, _p) in enumerate(params["task_conv"][t]):
            for k in range(w.shape[2]):
                put(f"tw{t}_{li}_{k}", np.kron(eye, np.asarray(w[:, :, k]).T))
            put(f"tb{t}_{li}", np.tile(np.asarray(b), BATCH).reshape(1, -1))
    for t in range(TASK_NUM):
        Lt, Ct = reg_dims[t]
        wt, bt = params["task_reg"][t]
        base = np.asarray(wt).reshape(Ct, Lt).T     # [j, c] = wt[0, c*Lt + j]
        for b in range(BATCH):
            tile = np.zeros((Lt, BATCH * Ct), np.float32)
            tile[:, b * Ct:(b + 1) * Ct] = base
            put(f"rw{t}_{b}", tile)
        put(f"rb{t}", np.asarray(bt).reshape(1, 1))
    wr, br = params["reg"]
    put("fw", np.asarray(wr).T)                     # (task_num, out_features)
    put("fb", np.asarray(br).reshape(1, -1))
    return jnp.asarray(slab)


@jax.jit
def pallas_forward(x_ncl, p_slab):
    # torch NCL (B, C, L) -> (L, B*C): lanes hold the whole batch's channels
    x_slab = jnp.transpose(x_ncl, (2, 0, 1)).reshape(
        FRAME_NUM, BATCH * FREQ_NUM).astype(jnp.float32)
    out = FUSED(x_slab, p_slab)                     # (B, out_features + task_num)
    return out[:, :OUT_FEATURES], out[:, OUT_FEATURES:]


# ----------------------------------------------------------------------------
# Pure-JAX reference replicating the PyTorch semantics (NCL layout)
# ----------------------------------------------------------------------------
def ref_conv1d(x, w, b, d):
    B, C_in, L = x.shape
    C_out, _, K = w.shape
    L_out = L - d * (K - 1)
    y = jnp.zeros((B, C_out, L_out), jnp.float32)
    for k in range(K):
        xs = x[:, :, k * d: k * d + L_out]
        y = y + jnp.einsum("oc,bcl->bol", w[:, :, k], xs)
    return y + b[None, :, None]


def ref_maxpool1d(x, pool):
    B, C, L = x.shape
    Lp = L // pool
    return x[:, :, : Lp * pool].reshape(B, C, Lp, pool).max(axis=-1)


def ref_forward(x, params):
    h = x.astype(jnp.float32)
    for (w, b, d, p) in params["common"]:
        h = ref_maxpool1d(jnp.maximum(ref_conv1d(h, w, b, d), 0.0), p)
    outs = []
    for t in range(TASK_NUM):
        ht = h
        for (w, b, d, p) in params["task_conv"][t]:
            ht = ref_maxpool1d(jnp.maximum(ref_conv1d(ht, w, b, d), 0.0), p)
        flat = ht.reshape(ht.shape[0], -1)          # torch.flatten(x, 1) on (B,C,T)
        wt, bt = params["task_reg"][t]
        outs.append(flat @ wt.T + bt)
    xcat = jnp.concatenate(outs, axis=1)
    wr, br = params["reg"]
    y = xcat @ wr.T + br
    return y, xcat


# ----------------------------------------------------------------------------
if __name__ == "__main__":
    key = jax.random.PRNGKey(0)
    k_x, k_p = jax.random.split(key)

    x = jax.random.normal(k_x, (BATCH, FREQ_NUM, FRAME_NUM), jnp.float32)  # (B, C, L)
    params = init_params(k_p)
    p_slab = pack_params(params, LAYOUT, REG_DIMS)

    y, xcat = pallas_forward(x, p_slab)
    y = jax.block_until_ready(y)
    xcat = jax.block_until_ready(xcat)

    y_ref, xcat_ref = ref_forward(x, params)

    assert y.shape == (BATCH, OUT_FEATURES) and xcat.shape == (BATCH, TASK_NUM)
    np.testing.assert_allclose(np.asarray(xcat), np.asarray(xcat_ref),
                               atol=1e-4, rtol=1e-4)
    np.testing.assert_allclose(np.asarray(y), np.asarray(y_ref),
                               atol=1e-4, rtol=1e-4)

    print("KERNEL_OK")
</pallas_src>

<mosaic_0001>
module attributes {stable_mosaic.version = 11 : i64} {
  func.func @kernel(%arg0: i32, %arg1: memref<32x8xf32, #tpu.memory_space<vmem>>, %arg2: memref<240x128xf32, #tpu.memory_space<vmem>>, %arg3: memref<2x3xf32, #tpu.memory_space<vmem>>, %arg4: memref<30x16xf32, #tpu.memory_space<vmem>>, %arg5: memref<13x16xf32, #tpu.memory_space<vmem>>, %arg6: memref<11x12xf32, #tpu.memory_space<vmem>>) attributes {dimension_semantics = [#tpu.dimension_semantics<arbitrary>], iteration_bounds = array<i64: 1>, scalar_prefetch = 0 : i64, scratch_operands = 3 : i64, tpu.core_type = #tpu.core_type<tc>, window_params = [{pipeline_mode = #tpu.pipeline_mode<synchronous>, transform_indices = @transform_0, window_bounds = array<i64: 32, 8>}, {pipeline_mode = #tpu.pipeline_mode<synchronous>, transform_indices = @transform_1, window_bounds = array<i64: 240, 128>}, {pipeline_mode = #tpu.pipeline_mode<synchronous>, transform_indices = @transform_2, window_bounds = array<i64: 2, 3>}]} {
    %c0 = arith.constant 0 : index
    %c0_0 = arith.constant 0 : index
    %0 = vector.load %arg1[%c0, %c0_0] : memref<32x8xf32, #tpu.memory_space<vmem>>, vector<32x8xf32>
    %1 = vector.extract_strided_slice %0 {offsets = [0, 0], sizes = [30, 8], strides = [1, 1]} : vector<32x8xf32> to vector<30x8xf32>
    %c0_1 = arith.constant 0 : index
    %c0_2 = arith.constant 0 : index
    %2 = vector.load %arg2[%c0_1, %c0_2] : memref<240x128xf32, #tpu.memory_space<vmem>>, vector<8x16xf32>
    %cst = arith.constant dense<0.000000e+00> : vector<30x16xf32>
    %3 = tpu.matmul %1, %2, %cst {dimension_numbers = #tpu.dot_dimension_numbers<[1], [0], [0], [1], [0, 0, 1, 1], [], []>} : vector<30x8xf32>, vector<8x16xf32>, vector<30x16xf32> -> vector<30x16xf32>
    %4 = vector.extract_strided_slice %0 {offsets = [1, 0], sizes = [30, 8], strides = [1, 1]} : vector<32x8xf32> to vector<30x8xf32>
    %c8 = arith.constant 8 : index
    %c0_3 = arith.constant 0 : index
    %5 = vector.load %arg2[%c8, %c0_3] : memref<240x128xf32, #tpu.memory_space<vmem>>, vector<8x16xf32>
    %cst_4 = arith.constant dense<0.000000e+00> : vector<30x16xf32>
    %6 = tpu.matmul %4, %5, %cst_4 {dimension_numbers = #tpu.dot_dimension_numbers<[1], [0], [0], [1], [0, 0, 1, 1], [], []>} : vector<30x8xf32>, vector<8x16xf32>, vector<30x16xf32> -> vector<30x16xf32>
    %7 = vector.extract_strided_slice %0 {offsets = [2, 0], sizes = [30, 8], strides = [1, 1]} : vector<32x8xf32> to vector<30x8xf32>
    %c16 = arith.constant 16 : index
    %c0_5 = arith.constant 0 : index
    %8 = vector.load %arg2[%c16, %c0_5] : memref<240x128xf32, #tpu.memory_space<vmem>>, vector<8x16xf32>
    %cst_6 = arith.constant dense<0.000000e+00> : vector<30x16xf32>
    %9 = tpu.matmul %7, %8, %cst_6 {dimension_numbers = #tpu.dot_dimension_numbers<[1], [0], [0], [1], [0, 0, 1, 1], [], []>} : vector<30x8xf32>, vector<8x16xf32>, vector<30x16xf32> -> vector<30x16xf32>
    %10 = arith.addf %3, %6 : vector<30x16xf32>
    %11 = arith.addf %10, %9 : vector<30x16xf32>
    %c24 = arith.constant 24 : index
    %c0_7 = arith.constant 0 : index
    %12 = vector.load %arg2[%c24, %c0_7] : memref<240x128xf32, #tpu.memory_space<vmem>>, vector<1x16xf32>
    %13 = vector.shape_cast %12 : vector<1x16xf32> to vector<1x16xf32>
    %14 = vector.broadcast %13 : vector<1x16xf32> to vector<30x16xf32>
    %15 = arith.addf %11, %14 : vector<30x16xf32>
    %cst_8 = arith.constant 0.000000e+00 : f32
    %16 = vector.broadcast %cst_8 : f32 to vector<30x16xf32>
    %17 = arith.maximumf %15, %16 : vector<30x16xf32>
    %c0_9 = arith.constant 0 : index
    %c0_10 = arith.constant 0 : index
    %18 = vector.load %arg4[%c0_9, %c0_10] : memref<30x16xf32, #tpu.memory_space<vmem>>, vector<30x16xf32>
    tpu.vector_store %arg4[%c0_9, %c0_10], %17 {strides = array<i32>} : memref<30x16xf32, #tpu.memory_space<vmem>>, vector<30x16xf32>,
    %c0_11 = arith.constant 0 : index
    %c0_12 = arith.constant 0 : index
    %19 = tpu.strided_load %arg4[%c0_11, %c0_12] {strides = array<i32: 2, 1>} : memref<30x16xf32, #tpu.memory_space<vmem>>, vector<15x16xf32>
    %c1 = arith.constant 1 : index
    %c0_13 = arith.constant 0 : index
    %20 = tpu.strided_load %arg4[%c1, %c0_13] {strides = array<i32: 2, 1>} : memref<30x16xf32, #tpu.memory_space<vmem>>, vector<15x16xf32>
    %21 = arith.maximumf %19, %20 : vector<15x16xf32>
    %22 = vector.extract_strided_slice %21 {offsets = [0, 0], sizes = [13, 16], strides = [1, 1]} : vector<15x16xf32> to vector<13x16xf32>
    %c32 = arith.constant 32 : index
    %c0_14 = arith.constant 0 : index
    %23 = vector.load %arg2[%c32, %c0_14] : memref<240x128xf32, #tpu.memory_space<vmem>>, vector<16x16xf32>
    %cst_15 = arith.constant dense<0.000000e+00> : vector<13x16xf32>
    %24 = tpu.matmul %22, %23, %cst_15 {dimension_numbers = #tpu.dot_dimension_numbers<[1], [0], [0], [1], [0, 0, 1, 1], [], []>} : vector<13x16xf32>, vector<16x16xf32>, vector<13x16xf32> -> vector<13x16xf32>
    %25 = vector.extract_strided_slice %21 {offsets = [1, 0], sizes = [13, 16], strides = [1, 1]} : vector<15x16xf32> to vector<13x16xf32>
    %c48 = arith.constant 48 : index
    %c0_16 = arith.constant 0 : index
    %26 = vector.load %arg2[%c48, %c0_16] : memref<240x128xf32, #tpu.memory_space<vmem>>, vector<16x16xf32>
    %cst_17 = arith.constant dense<0.000000e+00> : vector<13x16xf32>
    %27 = tpu.matmul %25, %26, %cst_17 {dimension_numbers = #tpu.dot_dimension_numbers<[1], [0], [0], [1], [0, 0, 1, 1], [], []>} : vector<13x16xf32>, vector<16x16xf32>, vector<13x16xf32> -> vector<13x16xf32>
    %28 = vector.extract_strided_slice %21 {offsets = [2, 0], sizes = [13, 16], strides = [1, 1]} : vector<15x16xf32> to vector<13x16xf32>
    %c64 = arith.constant 64 : index
    %c0_18 = arith.constant 0 : index
    %29 = vector.load %arg2[%c64, %c0_18] : memref<240x128xf32, #tpu.memory_space<vmem>>, vector<16x16xf32>
    %cst_19 = arith.constant dense<0.000000e+00> : vector<13x16xf32>
    %30 = tpu.matmul %28, %29, %cst_19 {dimension_numbers = #tpu.dot_dimension_numbers<[1], [0], [0], [1], [0, 0, 1, 1], [], []>} : vector<13x16xf32>, vector<16x16xf32>, vector<13x16xf32> -> vector<13x16xf32>
    %31 = arith.addf %24, %27 : vector<13x16xf32>
    %32 = arith.addf %31, %30 : vector<13x16xf32>
    %c80 = arith.constant 80 : index
    %c0_20 = arith.constant 0 : index
    %33 = vector.load %arg2[%c80, %c0_20] : memref<240x128xf32, #tpu.memory_space<vmem>>, vector<1x16xf32>
    %34 = vector.shape_cast %33 : vector<1x16xf32> to vector<1x16xf32>
    %35 = vector.broadcast %34 : vector<1x16xf32> to vector<13x16xf32>
    %36 = arith.addf %32, %35 : vector<13x16xf32>
    %cst_21 = arith.constant 0.000000e+00 : f32
    %37 = vector.broadcast %cst_21 : f32 to vector<13x16xf32>
    %38 = arith.maximumf %36, %37 : vector<13x16xf32>
    %c0_22 = arith.constant 0 : index
    %c0_23 = arith.constant 0 : index
    %39 = vector.load %arg5[%c0_22, %c0_23] : memref<13x16xf32, #tpu.memory_space<vmem>>, vector<13x16xf32>
    tpu.vector_store %arg5[%c0_22, %c0_23], %38 {strides = array<i32>} : memref<13x16xf32, #tpu.memory_space<vmem>>, vector<13x16xf32>,
    %c0_24 = arith.constant 0 : index
    %c0_25 = arith.constant 0 : index
    %40 = tpu.strided_load %arg5[%c0_24, %c0_25] {strides = array<i32: 2, 1>} : memref<13x16xf32, #tpu.memory_space<vmem>>, vector<6x16xf32>
    %c1_26 = arith.constant 1 : index
    %c0_27 = arith.constant 0 : index
    %41 = tpu.strided_load %arg5[%c1_26, %c0_27] {strides = array<i32: 2, 1>} : memref<13x16xf32, #tpu.memory_space<vmem>>, vector<6x16xf32>
    %42 = arith.maximumf %40, %41 : vector<6x16xf32>
    %c192 = arith.constant 192 : index
    %c0_28 = arith.constant 0 : index
    %43 = vector.load %arg2[%c192, %c0_28] : memref<240x128xf32, #tpu.memory_space<vmem>>, vector<1x1xf32>
    %c176 = arith.constant 176 : index
    %c0_29 = arith.constant 0 : index
    %44 = vector.load %arg2[%c176, %c0_29] : memref<240x128xf32, #tpu.memory_space<vmem>>, vector<6x16xf32>
    %45 = arith.mulf %42, %44 : vector<6x16xf32>
    %cst_30 = arith.constant dense<0.000000e+00> : vector<6xf32>
    %46 = vector.multi_reduction <add>, %45, %cst_30 [1] : vector<6x16xf32> to vector<6xf32>
    %47 = vector.shape_cast %46 : vector<6xf32> to vector<6x1xf32>
    %cst_31 = arith.constant dense<0.000000e+00> : vector<1xf32>
    %48 = vector.multi_reduction <add>, %47, %cst_31 [0] : vector<6x1xf32> to vector<1xf32>
    %49 = vector.shape_cast %48 : vector<1xf32> to vector<1x1xf32>
    %50 = arith.addf %49, %43 : vector<1x1xf32>
    %c184 = arith.constant 184 : index
    %c0_32 = arith.constant 0 : index
    %51 = vector.load %arg2[%c184, %c0_32] : memref<240x128xf32, #tpu.memory_space<vmem>>, vector<6x16xf32>
    %52 = arith.mulf %42, %51 : vector<6x16xf32>
    %cst_33 = arith.constant dense<0.000000e+00> : vector<6xf32>
    %53 = vector.multi_reduction <add>, %52, %cst_33 [1] : vector<6x16xf32> to vector<6xf32>
    %54 = vector.shape_cast %53 : vector<6xf32> to vector<6x1xf32>
    %cst_34 = arith.constant dense<0.000000e+00> : vector<1xf32>
    %55 = vector.multi_reduction <add>, %54, %cst_34 [0] : vector<6x1xf32> to vector<1xf32>
    %56 = vector.shape_cast %55 : vector<1xf32> to vector<1x1xf32>
    %57 = arith.addf %56, %43 : vector<1x1xf32>
    %58 = vector.extract_strided_slice %21 {offsets = [0, 0], sizes = [11, 16], strides = [1, 1]} : vector<15x16xf32> to vector<11x16xf32>
    %c88 = arith.constant 88 : index
    %c0_35 = arith.constant 0 : index
    %59 = vector.load %arg2[%c88, %c0_35] : memref<240x128xf32, #tpu.memory_space<vmem>>, vector<16x12xf32>
    %cst_36 = arith.constant dense<0.000000e+00> : vector<11x12xf32>
    %60 = tpu.matmul %58, %59, %cst_36 {dimension_numbers = #tpu.dot_dimension_numbers<[1], [0], [0], [1], [0, 0, 1, 1], [], []>} : vector<11x16xf32>, vector<16x12xf32>, vector<11x12xf32> -> vector<11x12xf32>
    %61 = vector.extract_strided_slice %21 {offsets = [1, 0], sizes = [11, 16], strides = [1, 1]} : vector<15x16xf32> to vector<11x16xf32>
    %c104 = arith.constant 104 : index
    %c0_37 = arith.constant 0 : index
    %62 = vector.load %arg2[%c104, %c0_37] : memref<240x128xf32, #tpu.memory_space<vmem>>, vector<16x12xf32>
    %cst_38 = arith.constant dense<0.000000e+00> : vector<11x12xf32>
    %63 = tpu.matmul %61, %62, %cst_38 {dimension_numbers = #tpu.dot_dimension_numbers<[1], [0], [0], [1], [0, 0, 1, 1], [], []>} : vector<11x16xf32>, vector<16x12xf32>, vector<11x12xf32> -> vector<11x12xf32>
    %64 = vector.extract_strided_slice %21 {offsets = [2, 0], sizes = [11, 16], strides = [1, 1]} : vector<15x16xf32> to vector<11x16xf32>
    %c120 = arith.constant 120 : index
    %c0_39 = arith.constant 0 : index
    %65 = vector.load %arg2[%c120, %c0_39] : memref<240x128xf32, #tpu.memory_space<vmem>>, vector<16x12xf32>
    %cst_40 = arith.constant dense<0.000000e+00> : vector<11x12xf32>
    %66 = tpu.matmul %64, %65, %cst_40 {dimension_numbers = #tpu.dot_dimension_numbers<[1], [0], [0], [1], [0, 0, 1, 1], [], []>} : vector<11x16xf32>, vector<16x12xf32>, vector<11x12xf32> -> vector<11x12xf32>
    %67 = vector.extract_strided_slice %21 {offsets = [3, 0], sizes = [11, 16], strides = [1, 1]} : vector<15x16xf32> to vector<11x16xf32>
    %c136 = arith.constant 136 : index
    %c0_41 = arith.constant 0 : index
    %68 = vector.load %arg2[%c136, %c0_41] : memref<240x128xf32, #tpu.memory_space<vmem>>, vector<16x12xf32>
    %cst_42 = arith.constant dense<0.000000e+00> : vector<11x12xf32>
    %69 = tpu.matmul %67, %68, %cst_42 {dimension_numbers = #tpu.dot_dimension_numbers<[1], [0], [0], [1], [0, 0, 1, 1], [], []>} : vector<11x16xf32>, vector<16x12xf32>, vector<11x12xf32> -> vector<11x12xf32>
    %70 = vector.extract_strided_slice %21 {offsets = [4, 0], sizes = [11, 16], strides = [1, 1]} : vector<15x16xf32> to vector<11x16xf32>
    %c152 = arith.constant 152 : index
    %c0_43 = arith.constant 0 : index
    %71 = vector.load %arg2[%c152, %c0_43] : memref<240x128xf32, #tpu.memory_space<vmem>>, vector<16x12xf32>
    %cst_44 = arith.constant dense<0.000000e+00> : vector<11x12xf32>
    %72 = tpu.matmul %70, %71, %cst_44 {dimension_numbers = #tpu.dot_dimension_numbers<[1], [0], [0], [1], [0, 0, 1, 1], [], []>} : vector<11x16xf32>, vector<16x12xf32>, vector<11x12xf32> -> vector<11x12xf32>
    %73 = arith.addf %60, %63 : vector<11x12xf32>
    %74 = arith.addf %66, %69 : vector<11x12xf32>
    %75 = arith.addf %73, %74 : vector<11x12xf32>
    %76 = arith.addf %75, %72 : vector<11x12xf32>
    %c168 = arith.constant 168 : index
    %c0_45 = arith.constant 0 : index
    %77 = vector.load %arg2[%c168, %c0_45] : memref<240x128xf32, #tpu.memory_space<vmem>>, vector<1x12xf32>
    %78 = vector.shape_cast %77 : vector<1x12xf32> to vector<1x12xf32>
    %79 = vector.broadcast %78 : vector<1x12xf32> to vector<11x12xf32>
    %80 = arith.addf %76, %79 : vector<11x12xf32>
    %cst_46 = arith.constant 0.000000e+00 : f32
    %81 = vector.broadcast %cst_46 : f32 to vector<11x12xf32>
    %82 = arith.maximumf %80, %81 : vector<11x12xf32>
    %c0_47 = arith.constant 0 : index
    %c0_48 = arith.constant 0 : index
    %83 = vector.load %arg6[%c0_47, %c0_48] : memref<11x12xf32, #tpu.memory_space<vmem>>, vector<11x12xf32>
    tpu.vector_store %arg6[%c0_47, %c0_48], %82 {strides = array<i32>} : memref<11x12xf32, #tpu.memory_space<vmem>>, vector<11x12xf32>,
    %c0_49 = arith.constant 0 : index
    %c0_50 = arith.constant 0 : index
    %84 = tpu.strided_load %arg6[%c0_49, %c0_50] {strides = array<i32: 2, 1>} : memref<11x12xf32, #tpu.memory_space<vmem>>, vector<5x12xf32>
    %c1_51 = arith.constant 1 : index
    %c0_52 = arith.constant 0 : index
    %85 = tpu.strided_load %arg6[%c1_51, %c0_52] {strides = array<i32: 2, 1>} : memref<11x12xf32, #tpu.memory_space<vmem>>, vector<5x12xf32>
    %86 = arith.maximumf %84, %85 : vector<5x12xf32>
    %c216 = arith.constant 216 : index
    %c0_53 = arith.constant 0 : index
    %87 = vector.load %arg2[%c216, %c0_53] : memref<240x128xf32, #tpu.memory_space<vmem>>, vector<1x1xf32>
    %c200 = arith.constant 200 : index
    %c0_54 = arith.constant 0 : index
    %88 = vector.load %arg2[%c200, %c0_54] : memref<240x128xf32, #tpu.memory_space<vmem>>, vector<5x12xf32>
    %89 = arith.mulf %86, %88 : vector<5x12xf32>
    %cst_55 = arith.constant dense<0.000000e+00> : vector<5xf32>
    %90 = vector.multi_reduction <add>, %89, %cst_55 [1] : vector<5x12xf32> to vector<5xf32>
    %91 = vector.shape_cast %90 : vector<5xf32> to vector<5x1xf32>
    %cst_56 = arith.constant dense<0.000000e+00> : vector<1xf32>
    %92 = vector.multi_reduction <add>, %91, %cst_56 [0] : vector<5x1xf32> to vector<1xf32>
    %93 = vector.shape_cast %92 : vector<1xf32> to vector<1x1xf32>
    %94 = arith.addf %93, %87 : vector<1x1xf32>
    %c208 = arith.constant 208 : index
    %c0_57 = arith.constant 0 : index
    %95 = vector.load %arg2[%c208, %c0_57] : memref<240x128xf32, #tpu.memory_space<vmem>>, vector<5x12xf32>
    %96 = arith.mulf %86, %95 : vector<5x12xf32>
    %cst_58 = arith.constant dense<0.000000e+00> : vector<5xf32>
    %97 = vector.multi_reduction <add>, %96, %cst_58 [1] : vector<5x12xf32> to vector<5xf32>
    %98 = vector.shape_cast %97 : vector<5xf32> to vector<5x1xf32>
    %cst_59 = arith.constant dense<0.000000e+00> : vector<1xf32>
    %99 = vector.multi_reduction <add>, %98, %cst_59 [0] : vector<5x1xf32> to vector<1xf32>
    %100 = vector.shape_cast %99 : vector<1xf32> to vector<1x1xf32>
    %101 = arith.addf %100, %87 : vector<1x1xf32>
    %c232 = arith.constant 232 : index
    %c0_60 = arith.constant 0 : index
    %102 = vector.load %arg2[%c232, %c0_60] : memref<240x128xf32, #tpu.memory_space<vmem>>, vector<1x1xf32>
    %c224 = arith.constant 224 : index
    %c0_61 = arith.constant 0 : index
    %103 = vector.load %arg2[%c224, %c0_61] : memref<240x128xf32, #tpu.memory_space<vmem>>, vector<1x1xf32>
    %104 = arith.mulf %50, %103 : vector<1x1xf32>
    %105 = arith.addf %102, %104 : vector<1x1xf32>
    %c0_62 = arith.constant 0 : index
    %c1_63 = arith.constant 1 : index
    %106 = vector.load %arg3[%c0_62, %c1_63] : memref<2x3xf32, #tpu.memory_space<vmem>>, vector<1x1xf32>
    tpu.vector_store %arg3[%c0_62, %c1_63], %50 {strides = array<i32>} : memref<2x3xf32, #tpu.memory_space<vmem>>, vector<1x1xf32>,
    %c225 = arith.constant 225 : index
    %c0_64 = arith.constant 0 : index
    %107 = vector.load %arg2[%c225, %c0_64] : memref<240x128xf32, #tpu.memory_space<vmem>>, vector<1x1xf32>
    %108 = arith.mulf %94, %107 : vector<1x1xf32>
    %109 = arith.addf %105, %108 : vector<1x1xf32>
    %c0_65 = arith.constant 0 : index
    %c2 = arith.constant 2 : index
    %110 = vector.load %arg3[%c0_65, %c2] : memref<2x3xf32, #tpu.memory_space<vmem>>, vector<1x1xf32>
    tpu.vector_store %arg3[%c0_65, %c2], %94 {strides = array<i32>} : memref<2x3xf32, #tpu.memory_space<vmem>>, vector<1x1xf32>,
    %c0_66 = arith.constant 0 : index
    %c0_67 = arith.constant 0 : index
    %111 = vector.load %arg3[%c0_66, %c0_67] : memref<2x3xf32, #tpu.memory_space<vmem>>, vector<1x1xf32>
    tpu.vector_store %arg3[%c0_66, %c0_67], %109 {strides = array<i32>} : memref<2x3xf32, #tpu.memory_space<vmem>>, vector<1x1xf32>,
    %c224_68 = arith.constant 224 : index
    %c0_69 = arith.constant 0 : index
    %112 = vector.load %arg2[%c224_68, %c0_69] : memref<240x128xf32, #tpu.memory_space<vmem>>, vector<1x1xf32>
    %113 = arith.mulf %57, %112 : vector<1x1xf32>
    %114 = arith.addf %102, %113 : vector<1x1xf32>
    %c1_70 = arith.constant 1 : index
    %c1_71 = arith.constant 1 : index
    %115 = vector.load %arg3[%c1_70, %c1_71] : memref<2x3xf32, #tpu.memory_space<vmem>>, vector<1x1xf32>
    tpu.vector_store %arg3[%c1_70, %c1_71], %57 {strides = array<i32>} : memref<2x3xf32, #tpu.memory_space<vmem>>, vector<1x1xf32>,
    %c225_72 = arith.constant 225 : index
    %c0_73 = arith.constant 0 : index
    %116 = vector.load %arg2[%c225_72, %c0_73] : memref<240x128xf32, #tpu.memory_space<vmem>>, vector<1x1xf32>
    %117 = arith.mulf %101, %116 : vector<1x1xf32>
    %118 = arith.addf %114, %117 : vector<1x1xf32>
    %c1_74 = arith.constant 1 : index
    %c2_75 = arith.constant 2 : index
    %119 = vector.load %arg3[%c1_74, %c2_75] : memref<2x3xf32, #tpu.memory_space<vmem>>, vector<1x1xf32>
    tpu.vector_store %arg3[%c1_74, %c2_75], %101 {strides = array<i32>} : memref<2x3xf32, #tpu.memory_space<vmem>>, vector<1x1xf32>,
    %c1_76 = arith.constant 1 : index
    %c0_77 = arith.constant 0 : index
    %120 = vector.load %arg3[%c1_76, %c0_77] : memref<2x3xf32, #tpu.memory_space<vmem>>, vector<1x1xf32>
    tpu.vector_store %arg3[%c1_76, %c0_77], %118 {strides = array<i32>} : memref<2x3xf32, #tpu.memory_space<vmem>>, vector<1x1xf32>,
    return
  }
  func.func @transform_0(%arg0: i32) -> (i32, i32) {
    %c0_i32 = arith.constant 0 : i32
    %c0_i32_0 = arith.constant 0 : i32
    %c0_i32_1 = arith.constant 0 : i32
    return %c0_i32, %c0_i32_0 : i32, i32
  }
  func.func @transform_1(%arg0: i32) -> (i32, i32) {
    %c0_i32 = arith.constant 0 : i32
    %c0_i32_0 = arith.constant 0 : i32
    %c0_i32_1 = arith.constant 0 : i32
    return %c0_i32, %c0_i32_0 : i32, i32
  }
  func.func @transform_2(%arg0: i32) -> (i32, i32) {
    %c0_i32 = arith.constant 0 : i32
    %c0_i32_0 = arith.constant 0 : i32
    %c0_i32_1 = arith.constant 0 : i32
    return %c0_i32, %c0_i32_0 : i32, i32
  }
}

</mosaic_0001>

<bundles_post_ra>
// kernel: pallas_forward.1
= control target key start
LH: loop header
LB: loop body
LE: loop exit
PB: predicated region body
PF: predicated region fallthrough
CT: control target
= control target key end

     0   :  { %7 = vsyncpa [#allocation6], 0  ;;  %s1392_s9 = smov [#allocation5]   ;;  %s1502_s0 = inlined_call_operand.vmem [shape: f32[32,8], index: 0, kind: input, shape index: {}]   ;;  %s1503_s1 = inlined_call_operand.hbm [shape: f32[240,128], index: 1, kind: input, shape index: {}]   ;;  %s1504_s2 = inlined_call_operand.vmem [shape: f32[2,3], index: 2, kind: output, shape index: {}]  }
   0x1   :  { %s15_s10 = sshll.u32 %s1392_s9, 4  ;;  %s1368_s13 = scalar_lea.hbm %s1503_s1, 3840  ;;  %s16_s10 = int_to_ptr.vmem [resolvable:$true] %s15_s10 }
   0x2   :  { %p1369_p0 = scmp.ne.s32.totalorder %s1503_s1, %s1368_s13  ;;  %p1372_p1 = scmp.lt.u32.totalorder %s1368_s13, %s1503_s1 }
   0x4   :  { %p1374_p2 = pnand %p1372_p1, %p1369_p0 }
   0x6   :  { %1377 = shalt.err (!%p1374_p2)
}
   0x7   :  { %s1378_s18 = scalar_lea.vmem %s16_s10, 3840  ;;  %p1383_p4 = scmp.lt.s32.totalorder %s16_s10, %s16_s10 }
   0x8   :  { %p1379_p3 = scmp.ne.s32.totalorder %s16_s10, %s1378_s18  ;;  %p1384_p5 = scmp.lt.s32.totalorder %s1378_s18, %s1378_s18 }
   0xa   :  { %p1385_p6 = por %p1384_p5, %p1383_p4 }
   0xc   :  { %p1386_p7 = pnand %p1385_p6, %p1379_p3 }
   0xe   :  { %1389 = shalt.err (!%p1386_p7)
}
   0xf   :  { %s1393_s19 = smov 128   ;;  %s1394_s20 = smov 8  }
  0x10   :  { %21 = dma.hbm_to_vmem [thread:$0]  %s1503_s1, 3840, %s16_s10, [#allocation6], %s1393_s19, %s1393_s19, %s1394_s20  }
  0x11   :  { %1390 = dma.done.wait [#allocation6], 3840  }
  0x12   :  { %1391 = vsyncadd [#allocation6], 4294963456  ;;  %v30_v0 = vld [vmem:[#allocation5 + $0x8] sm:$0xff]  ;;  %v25_v1 = vld [vmem:[%s1502_s0] sm:$0xff]  ;;  %vm35_vm0 = vcmask 1046528   ;;  %vm43_vm1 = vcmask 64512  }
  0x13   :  { %v26_v2 = vld [vmem:[%s1502_s0 + $0x8] sm:$0xff]  ;;  %1231 = vmatprep.subr.mxu0 %v30_v0  ;;  %v36_v3 = vrot.slane %v25_v1, 1  ;;  %v137_v5 = vld [vmem:[#allocation5 + $0x10] sm:$0xff]  ;;  %v28_v7 = vld [vmem:[%s1502_s0 + $0x18] sm:$0xff]  ;;  %v139_v11 = vrot.slane %v25_v1, 2  ;;  %vm138_vm2 = vcmask 1045504  }
  0x14   :  { %v37_v4 = vrot.slane %v26_v2, 1  ;;  %v27_v6 = vld [vmem:[%s1502_s0 + $0x10] sm:$0xff]  ;;  %1232 = vmatpush3.msra.mxu0 %v30_v0  ;;  %v41_v9 = vrot.slane %v28_v7, 1  ;;  %v140_v12 = vrot.slane %v26_v2, 2  ;;  %v29_v15 = vld [vmem:[#allocation5] sm:$0xff]  ;;  %v144_v18 = vrot.slane %v28_v7, 2 }
  0x15   :  { %v39_v8 = vrot.slane %v27_v6, 1  ;;  %1239 = vmatprep.subr.mxu0 %v137_v5  ;;  %v142_v16 = vrot.slane %v27_v6, 2  ;;  %v452_v21 = vld [vmem:[#allocation5 + $0x40] sm:$0xff]  ;;  %v453_v22 = vld [vmem:[#allocation5 + $0x48] sm:$0xff]  ;;  %v366_v23 = vld [vmem:[#allocation5 + $0x30] sm:$0xff]  ;;  %vm349_vm3 = vcmask 130048  }
  0x16   :  { %v38_v10 = vsel %vm35_vm0, %v36_v3, %v37_v4  ;;  %v141_v17 = vsel %vm138_vm2, %v139_v11, %v140_v12  ;;  %v1315_v24 = vpack.c.bf16 %v453_v22, %v452_v21  ;;  %v367_v25 = vld [vmem:[#allocation5 + $0x38] sm:$0xff]  ;;  %v364_v27 = vld [vmem:[#allocation5 + $0x20] sm:$0xff]  ;;  %v365_v28 = vld [vmem:[#allocation5 + $0x28] sm:$0xff]  ;;  %vm353_vm4 = vcmask 128000   ;;  %s1395_s0 = smov 1   ;;  %s1396_s30 = smov 2  }
  0x17   :  { %1233 = vmatprep.mubr.msk.f32.mxu0 %vm43_vm1, %v38_v10  ;;  %v40_v13 = vsel %vm35_vm0, %v37_v4, %v39_v8  ;;  %v42_v14 = vsel %vm35_vm0, %v39_v8, %v41_v9  ;;  %v143_v19 = vsel %vm138_vm2, %v140_v12, %v142_v16  ;;  %v145_v20 = vsel %vm138_vm2, %v142_v16, %v144_v18  ;;  %v1165_v30 = vld [vmem:[#allocation5 + $0x18] ss:$0 sm:$0xff]  ;;  %v662_v49 = vld [vmem:[#allocation5 + $0x68] sm:$0xff]  ;;  %v663_v50 = vld [vmem:[#allocation5 + $0x70] sm:$0xff] }
  0x18   :  { %1234 = vmatmul.mubr.msk.f32.vlgmr.msra.gmra.mrb[0].mxu0 %vm43_vm1, %v40_v13  ;;  %v1311_v26 = vpack.c.bf16 %v367_v25, %v366_v23  ;;  %1316 = vmatprep.subr.bf16.mxu1 %v1315_v24  ;;  %v1319_v29 = vpack.c.bf16 %v365_v28, %v364_v27  ;;  %v1323_v57 = vpack.c.bf16 %v663_v50, %v662_v49  ;;  %v741_v58 = vld [vmem:[#allocation5 + $0x88] sm:$0xff]  ;;  %v742_v59 = vld [vmem:[#allocation5 + $0x90] sm:$0xff]  ;;  %v826_v61 = vld [vmem:[#allocation5 + $0x98] sm:$0xff]  ;;  %vm743_vm5 = vcmask 1044480  }
  0x19   :  { %1240 = vmatpush3.msra.mxu0 %v137_v5  ;;  %1236 = vmatprep.mubr.msk.f32.mxu0 %vm43_vm1, %v42_v14  ;;  %v1327_v60 = vpack.c.bf16 %v742_v59, %v741_v58  ;;  %v827_v62 = vld [vmem:[#allocation5 + $0xa0] sm:$0xff]  ;;  %v660_v3 = vld [vmem:[#allocation5 + $0x58] sm:$0xff]  ;;  %vm828_vm6 = vcmask 1043456   ;;  %vm627_vm7 = vcmask 126976   ;;  %v634_v23 = vld [vmem:[#allocation5 + $0xb0] sm:$0x3f] }
  0x1a   :  { %1247 = vmatprep.subr.mxu0 %v29_v15  ;;  %1318 = vmatpush3.bf16.msra.mxu1 %v1315_v24  ;;  %v661_v4 = vld [vmem:[#allocation5 + $0x60] sm:$0xff]  ;;  %v647_v27 = vld [vmem:[#allocation5 + $0xb8] sm:$0x3f]  ;;  %vm1076_vm8 = vcmask 92160   ;;  %vm1074_vm9 = vcmask 97280   ;;  %vm1085_vm10 = vcmask 94208  }
  0x1b   :  { %1320 = vmatprep.subr.bf16.mxu1 %v1319_v29  ;;  %v740_v10 = vld [vmem:[#allocation5 + $0x80] sm:$0xff]  ;;  %vm1118_vm11 = vcmask 8200   ;;  %vm1127_vm12 = vcmask 16400   ;;  %vm1129_vm13 = vcmask 0  }
  0x1c   :  { %1237 = vmatmul.mubr.msk.f32.gmra.mrb[2].mxu0 %vm43_vm1, %v41_v9  ;;  %v739_v9 = vld [vmem:[#allocation5 + $0x78] sm:$0xff] }
  0x1d   :  { %1241 = vmatprep.mubr.msk.f32.mxu0 %vm43_vm1, %v141_v17  ;;  %v1339_v11 = vpack.c.bf16 %v740_v10, %v739_v9 }
  0x20   :  { %1242 = vmatmul.mubr.msk.f32.vlgmr.msra.gmra.mrb[0].mxu0 %vm43_vm1, %v143_v19 }
  0x21   :  { %1248 = vmatpush3.msra.mxu0 %v29_v15  ;;  %1244 = vmatprep.mubr.msk.f32.mxu0 %vm43_vm1, %v145_v20  ;;  %v1172_v15 = vld [vmem:[#allocation5 + $0x50] ss:$0 sm:$0xff] }
  0x22   :  { %1312 = vmatprep.subr.bf16.mxu0 %v1311_v26 }
  0x24   :  { %1245 = vmatmul.mubr.msk.f32.gmra.mrb[2].mxu0 %vm43_vm1, %v144_v18 }
  0x25   :  { %1249 = vmatprep.mubr.msk.f32.mxu0 %vm43_vm1, %v25_v1  ;;  %v1331_v1 = vpack.c.bf16 %v827_v62, %v826_v61 }
  0x28   :  { %1250 = vmatmul.mubr.msk.f32.vlgmr.msra.gmra.mrb[0].mxu0 %vm43_vm1, %v26_v2 }
  0x29   :  { %1252 = vmatprep.mubr.msk.f32.mxu0 %vm43_vm1, %v27_v6  ;;  %1314 = vmatpush3.bf16.msra.mxu0 %v1311_v26 }
  0x2c   :  { %1253 = vmatmul.mubr.msk.f32.gmra.mrb[2].mxu0 %vm43_vm1, %v28_v7  ;;  %v1335_v7 = vpack.c.bf16 %v661_v4, %v660_v3 }
  0xfb   :  { %v1251_v31 = vpop.f32.mrb[0].mxu0 }
  0xfc   :  { %v342_v32 = vadd.f32 %v1251_v31, %v1165_v30  ;;  %v313_v33 = vpop.f32.mrb[1].mxu0 }
  0xfd   :  { %v341_v34 = vadd.f32 %v1165_v30, %v313_v33 }
  0xfe   :  { %v346_v35 = vmax.f32 %v342_v32, 0.0  ;;  %v1183_v32 = vld [vmem:[#allocation5 + $0xa8] ss:$0 sm:$0xff] }
  0xff   :  { %v345_v36 = vmax.f32 %v341_v34, 0.0  ;;  %v1254_v37 = vpop.f32.mrb[2].mxu0 }
 0x100   :  { %351 = vst.msk [vmem:[#allocation2 + $0x8] sm:$0xff] %vm349_vm3, %v346_v35  ;;  %v344_v38 = vadd.f32 %v1254_v37, %v1165_v30  ;;  %v323_v39 = vpop.f32.mrb[3].mxu0 }
 0x101   :  { %350 = vst.msk [vmem:[#allocation2] sm:$0xff] %vm349_vm3, %v345_v36  ;;  %v343_v40 = vadd.f32 %v1165_v30, %v323_v39  ;;  %v1083_v39 = vld [vmem:[#allocation5 + $0xc8] sm:$0x1f] }
 0x102   :  { %v348_v41 = vmax.f32 %v344_v38, 0.0 }
 0x103   :  { %v347_v42 = vmax.f32 %v343_v40, 0.0 }
 0x104   :  { %354 = vst.msk [vmem:[#allocation2 + $0x18] sm:$0x3f] %vm353_vm4, %v348_v41 }
 0x105   :  { %352 = vst.msk [vmem:[#allocation2 + $0x10] sm:$0xff] %vm349_vm3, %v347_v42 }
 0x108   :  { %v355_v43 = vld [vmem:[#allocation2] ss:$2 sm:$0xff]  ;;  %v359_v44 = vld [vmem:[#allocation2 + $0x1] ss:$2 sm:$0xff] }
 0x109   :  { %v362_v45 = vmax.f32 %v355_v43, %v359_v44  ;;  %v1097_v43 = vld [vmem:[#allocation5 + $0xd0] sm:$0x1f] }
 0x10b   :  { %v370_v51 = vrot.slane %v362_v45, 1  ;;  %v454_v53 = vrot.slane %v362_v45, 2  ;;  %v744_v0 = vrot.slane %v362_v45, 3  ;;  %v829_v6 = vrot.slane %v362_v45, 4 }
 0x10c   :  { %v357_v46 = vld [vmem:[#allocation2 + $0x10] ss:$2 sm:$0x7f]  ;;  %v361_v47 = vld [vmem:[#allocation2 + $0x11] ss:$2 sm:$0x7f] }
 0x10d   :  { %v363_v48 = vmax.f32 %v357_v46, %v361_v47 }
 0x10f   :  { %v371_v52 = vrot.slane %v363_v48, 1  ;;  %v455_v54 = vrot.slane %v363_v48, 2  ;;  %v745_v63 = vrot.slane %v363_v48, 3  ;;  %v830_v5 = vrot.slane %v363_v48, 4 }
 0x111   :  { %v372_v55 = vsel %vm35_vm0, %v370_v51, %v371_v52  ;;  %v456_v56 = vsel %vm138_vm2, %v454_v53, %v455_v54  ;;  %v746_v2 = vsel %vm743_vm5, %v744_v0, %v745_v63  ;;  %v831_v8 = vsel %vm828_vm6, %v829_v6, %v830_v5 }
 0x112   :  { %1259 = vmatprep.mubr.msk.f32.mxu0 %vm349_vm3, %v372_v55  ;;  %1266 = vmatprep.mubr.msk.f32.mxu1 %vm349_vm3, %v456_v56 }
 0x113   :  { %1260 = vmatmul.mubr.msk.f32.vlgmr.msra.gmra.mrb[4].mxu0 %vm349_vm3, %v371_v52  ;;  %1267 = vmatmul.mubr.msk.f32.vlgmr.msra.gmra.mrb[0].mxu1 %vm349_vm3, %v455_v54 }
 0x114   :  { %1322 = vmatpush3.bf16.msra.mxu1 %v1319_v29  ;;  %1273 = vmatprep.mubr.msk.f32.mxu1 %vm349_vm3, %v362_v45 }
 0x115   :  { %1324 = vmatprep.subr.bf16.mxu1 %v1323_v57 }
 0x11b   :  { %1274 = vmatmul.mubr.msk.f32.vlgmr.msra.gmra.mrb[0].mxu1 %vm349_vm3, %v363_v48 }
 0x11c   :  { %1326 = vmatpush3.bf16.msra.mxu1 %v1323_v57  ;;  %1280 = vmatprep.mubr.msk.f32.mxu1 %vm349_vm3, %v372_v55 }
 0x11d   :  { %1328 = vmatprep.subr.bf16.mxu1 %v1327_v60 }
 0x11f   :  { %1281 = vmatmul.mubr.msk.f32.vlgmr.msra.gmra.mrb[2].mxu1 %vm349_vm3, %v371_v52 }
 0x120   :  { %1330 = vmatpush3.bf16.msra.mxu1 %v1327_v60  ;;  %1287 = vmatprep.mubr.msk.f32.mxu1 %vm349_vm3, %v746_v2  ;;  %v633_v60 = vld [vmem:[#allocation5 + $0xc0] sm:$0x1] }
 0x121   :  { %1332 = vmatprep.subr.bf16.mxu1 %v1331_v1 }
 0x127   :  { %1288 = vmatmul.mubr.msk.f32.vlgmr.msra.gmra.mrb[2].mxu1 %vm349_vm3, %v745_v63 }
 0x128   :  { %1334 = vmatpush3.bf16.msra.mxu1 %v1331_v1  ;;  %1294 = vmatprep.mubr.msk.f32.mxu1 %vm349_vm3, %v831_v8 }
 0x129   :  { %1336 = vmatprep.subr.bf16.mxu1 %v1335_v7 }
 0x12f   :  { %1295 = vmatmul.mubr.msk.f32.vlgmr.msra.gmra.mrb[2].mxu1 %vm349_vm3, %v830_v5 }
 0x130   :  { %1338 = vmatpush3.bf16.msra.mxu1 %v1335_v7  ;;  %1301 = vmatprep.mubr.msk.f32.mxu1 %vm349_vm3, %v362_v45 }
 0x131   :  { %1340 = vmatprep.subr.bf16.mxu1 %v1339_v11 }
 0x137   :  { %1302 = vmatmul.mubr.msk.f32.vlgmr.msra.gmra.mrb[2].mxu1 %vm349_vm3, %v363_v48 }
 0x138   :  { %1342 = vmatpush3.bf16.msra.mxu1 %v1339_v11  ;;  %1308 = vmatprep.mubr.msk.f32.mxu1 %vm349_vm3, %v456_v56 }
 0x13f   :  { %1309 = vmatmul.mubr.msk.f32.vlgmr.msra.gmra.mrb[2].mxu1 %vm349_vm3, %v455_v54 }
 0x1e6   :  { %v1261_v12 = vpop.f32.mrb[4].mxu0 }
 0x1e7   :  { %v443_v13 = vpop.f32.mrb[5].mxu0 }
 0x1ee   :  { %v1275_v14 = vpop.f32.mrb[0].mxu1 }
 0x1ef   :  { %v612_v16 = vadd.f32 %v1275_v14, %v1261_v12  ;;  %v606_v17 = vpop.f32.mrb[1].mxu1 }
 0x1f0   :  { %v607_v18 = vadd.f32 %v606_v17, %v443_v13  ;;  %v1111_v13 = vld [vmem:[#allocation5 + $0xe0] sm:$0x1]  ;;  %v1110_v17 = vld [vmem:[#allocation5 + $0xe8] sm:$0x1] }
 0x1f1   :  { %v623_v19 = vadd.f32 %v1172_v15, %v612_v16  ;;  %v1082_v16 = vld [vmem:[#allocation5 + $0xd8] sm:$0x1] }
 0x1f2   :  { %v622_v20 = vadd.f32 %v1172_v15, %v607_v18 }
 0x1f3   :  { %v625_v21 = vmax.f32 %v623_v19, 0.0 }
 0x1f4   :  { %v624_v22 = vmax.f32 %v622_v20, 0.0 }
 0x1f5   :  { %628 = vst.msk [vmem:[#allocation3 + $0x8] sm:$0x1f] %vm627_vm7, %v625_v21  ;;  %v1131_v21 = vld [vmem:[#allocation5 + $0xe0] sm:$0x1] }
 0x1f6   :  { %626 = vst.msk [vmem:[#allocation3] sm:$0xff] %vm349_vm3, %v624_v22  ;;  %v1120_v22 = vld [vmem:[#allocation5 + $0xe1] sm:$0x1] }
 0x1fd   :  { %v629_v24 = vld [vmem:[#allocation3] ss:$2 sm:$0x3f]  ;;  %v631_v25 = vld [vmem:[#allocation3 + $0x1] ss:$2 sm:$0x3f] }
 0x1fe   :  { %v632_v26 = vmax.f32 %v629_v24, %v631_v25 }
 0x200   :  { %v635_v28 = vmul.f32 %v634_v23, %v632_v26  ;;  %v648_v30 = vmul.f32 %v647_v27, %v632_v26 }
 0x202   :  { %v636_v29 = vsel %vm353_vm4, %v635_v28, 0.0  ;;  %v649_v31 = vsel %vm353_vm4, %v648_v30, 0.0 }
 0x203   :  { %637 = vadd.xlane.f32.xlu0 %v636_v29  ;;  %v1139_v29 = vld [vmem:[#allocation5 + $0xe1] sm:$0x1] }
 0x207   :  { %650 = vadd.xlane.f32.xlu0 %v649_v31 }
 0x212   :  { %v1310_v33 = vpop.f32.mrb[2].mxu1 }
 0x213   :  { %v1071_v34 = vadd.f32 %v1310_v33, %v1183_v32  ;;  %v1052_v35 = vpop.f32.mrb[3].mxu1 }
 0x214   :  { %v1070_v36 = vadd.f32 %v1183_v32, %v1052_v35 }
 0x215   :  { %v1073_v37 = vmax.f32 %v1071_v34, 0.0 }
 0x216   :  { %v1072_v38 = vmax.f32 %v1070_v36, 0.0 }
 0x217   :  { %1077 = vst.msk [vmem:[#allocation4 + $0x8] sm:$0x7] %vm1076_vm8, %v1073_v37 }
 0x218   :  { %1075 = vst.msk [vmem:[#allocation4] sm:$0xff] %vm1074_vm9, %v1072_v38 }
 0x21f   :  { %v1078_v40 = vld [vmem:[#allocation4] ss:$2 sm:$0x1f]  ;;  %v1080_v41 = vld [vmem:[#allocation4 + $0x1] ss:$2 sm:$0x1f] }
 0x220   :  { %v1081_v42 = vmax.f32 %v1078_v40, %v1080_v41 }
 0x222   :  { %v1084_v44 = vmul.f32 %v1083_v39, %v1081_v42  ;;  %v1098_v46 = vmul.f32 %v1097_v43, %v1081_v42 }
 0x224   :  { %v1086_v45 = vsel %vm1085_vm10, %v1084_v44, 0.0  ;;  %v1099_v47 = vsel %vm1085_vm10, %v1098_v46, 0.0 }
 0x225   :  { %1087 = vadd.xlane.f32.xlu1 %v1086_v45 }
 0x229   :  { %1100 = vadd.xlane.f32.xlu1 %v1099_v47 }
 0x290   :  { %v638_v48 = vpop.xlane.xlu0 %637 }
 0x291   :  { %v639_v49 = vsel %vm138_vm2, %v638_v48, 0.0 }
 0x292   :  { %v640_v50 = vrot.slane %v639_v49, 4 }
 0x294   :  { %v641_v51 = vadd.f32 %v640_v50, %v639_v49  ;;  %v651_v52 = vpop.xlane.xlu0 %650 }
 0x295   :  { %v652_v53 = vsel %vm138_vm2, %v651_v52, 0.0 }
 0x296   :  { %v642_v54 = vrot.slane %v641_v51, 2  ;;  %v653_v55 = vrot.slane %v652_v53, 4 }
 0x298   :  { %v643_v56 = vadd.f32 %v642_v54, %v641_v51  ;;  %v654_v57 = vadd.f32 %v653_v55, %v652_v53 }
 0x29a   :  { %v644_v58 = vrot.slane %v643_v56, 1  ;;  %v655_v59 = vrot.slane %v654_v57, 2 }
 0x29c   :  { %v645_v61 = vadd.f32 %v644_v58, %v643_v56  ;;  %v656_v62 = vadd.f32 %v655_v59, %v654_v57 }
 0x29e   :  { %v657_v63 = vrot.slane %v656_v62, 1  ;;  %v646_v0 = vadd.f32 %v645_v61, %v633_v60 }
 0x2a0   :  { %v658_v1 = vadd.f32 %v657_v63, %v656_v62  ;;  %1115 = vrot.lane.b32.xlu0 %v646_v0, %s1395_s0  ;;  %v1112_v18 = vmul.f32 %v1111_v13, %v646_v0 }
 0x2a2   :  { %v659_v2 = vadd.f32 %v658_v1, %v633_v60  ;;  %v1113_v25 = vadd.f32 %v1112_v18, %v1110_v17 }
 0x2a4   :  { %1135 = vrot.lane.b32.xlu1 %v659_v2, %s1395_s0  ;;  %v1132_v26 = vmul.f32 %v1131_v21, %v659_v2 }
 0x2a6   :  { %v1133_v32 = vadd.f32 %v1132_v26, %v1110_v17 }
 0x2b2   :  { %v1088_v3 = vpop.xlane.xlu1 %1087 }
 0x2b3   :  { %v1089_v4 = vsel %vm743_vm5, %v1088_v3, 0.0 }
 0x2b4   :  { %v1090_v5 = vrot.slane %v1089_v4, 4 }
 0x2b6   :  { %v1091_v6 = vadd.f32 %v1090_v5, %v1089_v4  ;;  %v1101_v7 = vpop.xlane.xlu1 %1100 }
 0x2b7   :  { %v1102_v8 = vsel %vm743_vm5, %v1101_v7, 0.0 }
 0x2b8   :  { %v1092_v9 = vrot.slane %v1091_v6, 2  ;;  %v1103_v10 = vrot.slane %v1102_v8, 4 }
 0x2ba   :  { %v1093_v11 = vadd.f32 %v1092_v9, %v1091_v6  ;;  %v1104_v12 = vadd.f32 %v1103_v10, %v1102_v8 }
 0x2bc   :  { %v1094_v14 = vrot.slane %v1093_v11, 1  ;;  %v1105_v15 = vrot.slane %v1104_v12, 2 }
 0x2be   :  { %v1095_v19 = vadd.f32 %v1094_v14, %v1093_v11  ;;  %v1106_v20 = vadd.f32 %v1105_v15, %v1104_v12 }
 0x2c0   :  { %v1107_v23 = vrot.slane %v1106_v20, 1  ;;  %v1096_v24 = vadd.f32 %v1095_v19, %v1082_v16 }
 0x2c2   :  { %v1108_v27 = vadd.f32 %v1107_v23, %v1106_v20  ;;  %v1121_v28 = vmul.f32 %v1120_v22, %v1096_v24  ;;  %1124 = vrot.lane.b32.xlu1 %v1096_v24, %s1396_s30 }
 0x2c4   :  { %v1122_v30 = vadd.f32 %v1121_v28, %v1113_v25  ;;  %v1109_v31 = vadd.f32 %v1108_v27, %v1082_v16 }
 0x2c6   :  { %v1140_v33 = vmul.f32 %v1139_v29, %v1109_v31  ;;  %1143 = vrot.lane.b32.xlu1 %v1109_v31, %s1396_s30 }
 0x2c8   :  { %v1141_v34 = vadd.f32 %v1140_v33, %v1133_v32 }
 0x312   :  { %v1116_v35 = vpop.permute.xlu0 %1115 }
 0x313   :  { %1119 = vst.msk [vmem:[%s1504_s2] sm:$0x1] %vm1118_vm11, %v1116_v35 }
 0x316   :  { %v1136_v36 = vpop.permute.xlu1 %1135 }
 0x317   :  { %1138 = vst.msk [vmem:[%s1504_s2 + $0x1] sm:$0x1] %vm1118_vm11, %v1136_v36 }
 0x334   :  { %v1125_v37 = vpop.permute.xlu1 %1124 }
 0x335   :  { %1128 = vst.msk [vmem:[%s1504_s2] sm:$0x1] %vm1127_vm12, %v1125_v37 }
 0x336   :  { %1130 = vst.msk [vmem:[%s1504_s2] sm:$0x1] %vm1129_vm13, %v1122_v30 }
 0x338   :  { %v1144_v38 = vpop.permute.xlu1 %1143 }
 0x339   :  { %1146 = vst.msk [vmem:[%s1504_s2 + $0x1] sm:$0x1] %vm1127_vm12, %v1144_v38 }
 0x33a   :  { %1147 = vst.msk [vmem:[%s1504_s2 + $0x1] sm:$0x1] %vm1129_vm13, %v1141_v34 }
 0x33b   :  { %1152 = vsyncpa [#allocation6], 1 }

</bundles_post_ra>
